<compile_context>
chip_gen: v7x
topology: tpu7x:2x2x1
jax: 0.10.0
libtpu: 0.0.40
codegen_flags: <defaults>
</compile_context>

<pallas_src>
import jax
import jax.numpy as jnp
import numpy as np
from jax.experimental import pallas as pl
from jax.experimental.pallas import tpu as pltpu


def _identity_dma_kernel(x_hbm, o_hbm, sem):
    # Whole forward pass of Block is identity; as a launched kernel it is one
    # bulk HBM->HBM DMA descriptor: the DMA engine runs at full HBM bandwidth,
    # with zero VMEM staging and zero vector-unit work.
    cp = pltpu.make_async_copy(x_hbm, o_hbm, sem)
    cp.start()
    cp.wait()


def block_forward(x):
    """Pallas-module implementation of Block.forward (identity).

    Zero-cost path: Block.forward(x) == x, so no kernel is launched and no
    HBM traffic is generated.  Prefer this in real pipelines.
    """
    return x


def block_forward_pallas(x):
    """Identity expressed as a launched Pallas kernel.

    Only needed when a *fresh* materialized output buffer is required (e.g. the
    caller must not alias the input).  Implemented as a single bulk HBM->HBM
    DMA: no grid, no VMEM round trip, no per-tile step overhead — optimal on
    v5e / v6e / v7x alike.
    """
    if x.size == 0:
        return x
    return pl.pallas_call(
        _identity_dma_kernel,
        out_shape=jax.ShapeDtypeStruct(x.shape, x.dtype),
        in_specs=[pl.BlockSpec(memory_space=pl.ANY)],
        out_specs=pl.BlockSpec(memory_space=pl.ANY),
        scratch_shapes=[pltpu.SemaphoreType.DMA(())],
    )(x)


if __name__ == "__main__":
    key = jax.random.PRNGKey(0)
    # Block has no parameters (__init__ defines none); just an NCHW activation.
    x = jax.random.normal(key, (2, 4, 16, 16), dtype=jnp.float32)
    x_np = np.asarray(x)

    # Zero-cost identity (the real optimization: no kernel launch at all).
    y_fast = jax.block_until_ready(block_forward(x))

    # Launched-kernel identity: single bulk HBM->HBM DMA.
    y_kernel = jax.block_until_ready(block_forward_pallas(x))

    assert y_fast.shape == x_np.shape and y_fast.dtype == x_np.dtype
    assert y_kernel.shape == x_np.shape and y_kernel.dtype == x_np.dtype
    np.testing.assert_array_equal(np.asarray(y_fast), x_np)
    np.testing.assert_array_equal(np.asarray(y_kernel), x_np)
    print("KERNEL_OK")
</pallas_src>

<mosaic_0001>
module attributes {stable_mosaic.version = 11 : i64} {
  func.func @_identity_dma_kernel(%arg0: memref<2x4x16x16xf32, #tpu.memory_space<any>>, %arg1: memref<2x4x16x16xf32, #tpu.memory_space<any>>, %arg2: memref<!tpu.dma_semaphore, #tpu.memory_space<semaphore_mem>>) attributes {dimension_semantics = [], scalar_prefetch = 0 : i64, scratch_operands = 1 : i64, tpu.core_type = #tpu.core_type<tc>} {
    tpu.enqueue_dma source(%arg0 : memref<2x4x16x16xf32, #tpu.memory_space<any>>) target(%arg1 : memref<2x4x16x16xf32, #tpu.memory_space<any>>) target_semaphore(%arg2 : memref<!tpu.dma_semaphore, #tpu.memory_space<semaphore_mem>>)
    tpu.wait_dma2 semaphore(%arg2 : memref<!tpu.dma_semaphore, #tpu.memory_space<semaphore_mem>>) src(%arg0 : memref<2x4x16x16xf32, #tpu.memory_space<any>>) dst(%arg1 : memref<2x4x16x16xf32, #tpu.memory_space<any>>)
    return
  }
}

</mosaic_0001>

<bundles_post_ra>
// kernel: tpu_custom_call.1
= control target key start
LH: loop header
LB: loop body
LE: loop exit
PB: predicated region body
PF: predicated region fallthrough
CT: control target
= control target key end

     0   :  { %s36_s6 = smov [#allocation2]   ;;  %s37_s7 = smov [#allocation3]   ;;  %s55_s0 = inlined_call_operand.hbm [shape: f32[2,4,16,16], index: 0, kind: input, shape index: {}]   ;;  %s56_s1 = inlined_call_operand.hbm [shape: f32[2,4,16,16], index: 1, kind: output, shape index: {}]  }
   0x1   :  { %s38_s8 = smov 0  }
   0x2   :  { %18 = dma.general %s55_s0, 2048, %s56_s1, %s36_s6, %s37_s7, [#allocation4], %s38_s8, 0  }
   0x3   :  { %34 = dma.done.wait [#allocation2], 2048 }
   0x4   :  { %35 = vsyncadd [#allocation2], 4294965248 }
   0x5   :  { %24 = vsyncmov [#allocation2] }
   0x8   :  { %s25_s13 = vpop.sfrf %24 }
   0x9   :  { %p30_p0 = scmp.ne.s32.totalorder %s25_s13, 0 }
   0xb   :  { %29 = shalt.err (%p30_p0)  }

</bundles_post_ra>
